<compile_context>
chip_gen: v7x
topology: tpu7x:2x2x1
jax: 0.10.0
libtpu: 0.0.40
codegen_flags: <defaults>
</compile_context>

<pallas_src>
import functools

import jax
import jax.numpy as jnp
from jax import lax
from jax.experimental import pallas as pl
from jax.experimental.pallas import tpu as pltpu

EPS = 1e-5


# --------------------------------------------------------------------------
# Kernel
# --------------------------------------------------------------------------
def basic_block_kernel(x_ref, w1_ref, w2_ref, g1_ref, b1_ref, g2_ref, b2_ref,
                       sel_ref, bcast_ref, out_ref, *, N, H, no_relu):
    """Monolithic VMEM-resident BasicBlock forward.

    x_ref    : (Mp, W*C) f32, Mp = N*(H+2); per-image H-halo rows are zero.
    w*_ref   : (3*W*C, W*C) bf16 fused block-banded conv weights.
    g*/b*_ref: (1, C) f32 BN affine params.
    sel_ref  : (W*C, C) f32 lane->channel reducer; bcast_ref = sel.T.
    out_ref  : (Mv, W*C) f32, Mv = Mp-2; row r is padded-center-row r+1
               (rows whose window crosses an image boundary are garbage and
               are discarded by the host wrapper).
    """
    Mp, WC = x_ref.shape
    Mv = Mp - 2
    Hp = H + 2
    C = g1_ref.shape[-1]
    inv_m = 1.0 / float(N * H * (WC // C))      # elements per channel for BN

    # Row-validity mask: output row r is valid iff (r mod Hp) < H.  Built with
    # static integer compares (N-1 boundary pairs), no vector int-div needed.
    if N > 1:
        row = lax.broadcasted_iota(jnp.int32, (Mv, WC), 0)
        valid = row >= 0                                    # all-true start
        for n in range(N - 1):
            lo = n * Hp + H
            valid = jnp.logical_and(valid,
                                    jnp.logical_or(row < lo, row >= lo + 2))
        mask = lambda a: jnp.where(valid, a, 0.0)
    else:
        mask = lambda a: a                                  # no garbage rows

    def conv3x3(r0, r1, r2, w_ref):
        # Single fused MXU launch per conv: K = 3*W*Cin, f32 accumulation.
        lhs = jnp.concatenate(
            [r0.astype(jnp.bfloat16), r1.astype(jnp.bfloat16),
             r2.astype(jnp.bfloat16)], axis=1)              # (Mv, 3*WC) bf16
        return jnp.dot(lhs, w_ref[...], preferred_element_type=jnp.float32)

    def batchnorm(acc, g_ref, b_ref):
        # Training-mode BN over the lane-dense layout; garbage rows excluded.
        # One-pass stats (E[x^2]-mean^2): fine here since conv outputs are
        # near zero-mean; TODO(synk): mean-shifted two-pass if that changes.
        accm = mask(acc)
        red = jnp.concatenate(
            [jnp.sum(accm, axis=0, keepdims=True),
             jnp.sum(accm * accm, axis=0, keepdims=True)], axis=0)   # (2, WC)
        stats = jnp.dot(red, sel_ref[...],
                        preferred_element_type=jnp.float32) * inv_m  # (2, C)
        mean = stats[0:1, :]
        var = stats[1:2, :] - mean * mean
        scale = g_ref[...] * lax.rsqrt(var + EPS)                    # (1, C)
        shift = b_ref[...] - mean * scale                            # (1, C)
        ssl = jnp.dot(jnp.concatenate([scale, shift], axis=0), bcast_ref[...],
                      preferred_element_type=jnp.float32)            # (2, WC)
        return acc * ssl[0:1, :] + ssl[1:2, :]

    # ---------------- conv1 + bn1 + relu -------------------------------------
    acc1 = conv3x3(x_ref[0:Mv, :], x_ref[1:1 + Mv, :], x_ref[2:2 + Mv, :],
                   w1_ref)
    h1 = mask(jnp.maximum(batchnorm(acc1, g1_ref, b1_ref), 0.0))

    # ---------------- conv2 + bn2 --------------------------------------------
    # Re-create the padded layout at value level (garbage rows of h1 are
    # already zero, so they double as the interior halo rows) — no VMEM
    # scratch round trip.
    zrow = jnp.zeros((1, WC), jnp.float32)
    h1p = jnp.concatenate([zrow, h1, zrow], axis=0)                  # (Mp, WC)
    acc2 = conv3x3(h1p[0:Mv, :], h1p[1:1 + Mv, :], h1p[2:2 + Mv, :], w2_ref)
    y = batchnorm(acc2, g2_ref, b2_ref)

    # ---------------- residual add + final relu ------------------------------
    out = y + x_ref[1:1 + Mv, :]          # residual = interior rows of input
    out_ref[...] = out if no_relu else jnp.maximum(out, 0.0)


# --------------------------------------------------------------------------
# Host-side helpers / wrapper
# --------------------------------------------------------------------------
def _fused_banded_weights(w_hwio, W, dtype=jnp.bfloat16):
    """(3,3,Cin,Cout) HWIO -> (3*W*Cin, W*Cout) fused block-banded matrix.

    For kernel row dh, block dh holds entry
      [(wo+dw-1)*Cin + cin, wo*Cout + cout] = w[dh, dw, cin, cout]
    (out-of-range width terms absent => zero padding along W folded in).
    TODO(synk): in a full network these are per-layer constants — build them
    once outside the step function so neither the construction nor the bytes
    are paid per call.
    """
    _, _, Cin, Cout = w_hwio.shape
    mats = []
    for dh in range(3):
        mat = jnp.zeros((W * Cin, W * Cout), jnp.float32)
        for dw in range(3):
            band = jnp.eye(W, W, k=1 - dw, dtype=jnp.float32)
            mat = mat + jnp.kron(band, w_hwio[dh, dw].astype(jnp.float32))
        mats.append(mat)
    return jnp.concatenate(mats, axis=0).astype(dtype)


def _vmem_tile_bytes(shape, dtype):
    r, c = shape
    return (-(-r // 8) * 8) * (-(-c // 128) * 128) * jnp.dtype(dtype).itemsize


def basic_block(x_nchw, params, *, stride=1, downsample=None, no_relu=False):
    """x_nchw: (N, C, H, W) float32. Returns (N, C, H, W) float32."""
    assert stride == 1 and downsample is None, (
        "TODO(synk): stride>1 / custom downsample branch not implemented")
    w1, _b1, g1, be1, w2, _b2, g2, be2 = params   # conv biases are dead (BN)
    N, C, H, W = x_nchw.shape
    WC = W * C
    Mp, Mv = N * (H + 2), N * (H + 2) - 2

    # Lane-dense flat layout: rows = padded image rows, lanes = W*C.
    x = jnp.transpose(x_nchw, (0, 2, 3, 1)).reshape(N, H, WC)
    x_flat = jnp.pad(x, ((0, 0), (1, 1), (0, 0))).reshape(Mp, WC)

    w1f = _fused_banded_weights(w1, W)                      # (3*WC, WC) bf16
    w2f = _fused_banded_weights(w2, W)
    sel = jnp.tile(jnp.eye(C, dtype=jnp.float32), (W, 1))   # (WC, C)
    bcast = sel.T                                           # (C, WC)

    inputs = (x_flat, w1f, w2f,
              g1.reshape(1, C).astype(jnp.float32),
              be1.reshape(1, C).astype(jnp.float32),
              g2.reshape(1, C).astype(jnp.float32),
              be2.reshape(1, C).astype(jnp.float32),
              sel, bcast)

    # VMEM budget: tile-padded buffer bytes + conservative working-set
    # estimate (~32 activation slabs for LHS/acc/BN temporaries) + 30% headroom.
    buf_bytes = sum(_vmem_tile_bytes(a.shape, a.dtype) for a in inputs)
    buf_bytes += _vmem_tile_bytes((Mv, WC), jnp.float32)            # output
    temp_bytes = 32 * _vmem_tile_bytes((Mv, WC), jnp.float32)
    vmem_limit = max(4 << 20, int(1.3 * (buf_bytes + temp_bytes)))

    vmem = pl.BlockSpec(memory_space=pltpu.MemorySpace.VMEM)
    kernel = functools.partial(basic_block_kernel, N=N, H=H, no_relu=no_relu)
    out_flat = pl.pallas_call(
        kernel,
        out_shape=jax.ShapeDtypeStruct((Mv, WC), jnp.float32),
        in_specs=[vmem] * len(inputs),
        out_specs=vmem,
        compiler_params=pltpu.CompilerParams(vmem_limit_bytes=vmem_limit),
    )(*inputs)

    # Drop the boundary-straddling rows and return to NCHW.
    out = jnp.pad(out_flat, ((1, 1), (0, 0))).reshape(N, H + 2, W, C)[:, 1:H + 1]
    return jnp.transpose(out, (0, 3, 1, 2))


# --------------------------------------------------------------------------
# Pure-JAX reference (keeps conv biases + two-pass variance, validating that
# dropping the biases in-kernel is exact under training-mode BN).
# --------------------------------------------------------------------------
def reference(x_nchw, params):
    w1, b1, g1, be1, w2, b2, g2, be2 = params
    x = jnp.transpose(x_nchw, (0, 2, 3, 1))

    def conv(h, w, b):
        y = lax.conv_general_dilated(h, w, (1, 1), 'SAME',
                                     dimension_numbers=('NHWC', 'HWIO', 'NHWC'))
        return y + b

    def bn(h, g, be):
        mu = jnp.mean(h, axis=(0, 1, 2), keepdims=True)
        v = jnp.mean((h - mu) ** 2, axis=(0, 1, 2), keepdims=True)
        return (h - mu) * lax.rsqrt(v + EPS) * g + be

    out = jnp.maximum(bn(conv(x, w1, b1), g1, be1), 0.0)
    out = bn(conv(out, w2, b2), g2, be2)
    out = jnp.maximum(out + x, 0.0)
    return jnp.transpose(out, (0, 3, 1, 2))


if __name__ == "__main__":
    N, C, H, W = 2, 8, 16, 16          # in_channels == out_channels, W*C = 128
    key = jax.random.PRNGKey(0)
    k = jax.random.split(key, 6)

    x = jax.random.normal(k[0], (N, C, H, W), jnp.float32)

    # Deterministic synthetic parameters (HWIO conv weights).
    w1 = 0.1 * jax.random.normal(k[1], (3, 3, C, C), jnp.float32)
    b1 = 0.05 * jax.random.normal(k[2], (C,), jnp.float32)
    w2 = 0.1 * jax.random.normal(k[3], (3, 3, C, C), jnp.float32)
    b2 = 0.05 * jax.random.normal(k[4], (C,), jnp.float32)
    g1 = 1.0 + 0.1 * jax.random.normal(k[5], (C,), jnp.float32)
    be1 = jnp.linspace(-0.1, 0.1, C, dtype=jnp.float32)
    g2 = jnp.ones((C,), jnp.float32)
    be2 = jnp.zeros((C,), jnp.float32)
    params = (w1, b1, g1, be1, w2, b2, g2, be2)

    y = jax.block_until_ready(basic_block(x, params))
    y_ref = jax.block_until_ready(reference(x, params))
    assert y.shape == (N, C, H, W)
    err = float(jnp.max(jnp.abs(y - y_ref)))
    # bf16 MXU operands over 72-term effective dot products (two stacked convs
    # + BN rescaling) give ~1e-2 worst-case rounding vs the f32 reference; the
    # all-f32 build of this same kernel matched at <2e-3.
    assert err < 5e-2, err

    print("KERNEL_OK")
</pallas_src>

<mosaic_0001>
module attributes {stable_mosaic.version = 11 : i64} {
  func.func @basic_block_kernel(%arg0: memref<36x128xf32, #tpu.memory_space<vmem>>, %arg1: memref<384x128xbf16, #tpu.memory_space<vmem>>, %arg2: memref<384x128xbf16, #tpu.memory_space<vmem>>, %arg3: memref<1x8xf32, #tpu.memory_space<vmem>>, %arg4: memref<1x8xf32, #tpu.memory_space<vmem>>, %arg5: memref<1x8xf32, #tpu.memory_space<vmem>>, %arg6: memref<1x8xf32, #tpu.memory_space<vmem>>, %arg7: memref<128x8xf32, #tpu.memory_space<vmem>>, %arg8: memref<8x128xf32, #tpu.memory_space<vmem>>, %arg9: memref<34x128xf32, #tpu.memory_space<vmem>>) attributes {dimension_semantics = [], scalar_prefetch = 0 : i64, scratch_operands = 0 : i64, tpu.core_type = #tpu.core_type<tc>} {
    %0 = tpu.iota {dimensions = array<i32: 0>} : vector<34x128xi32>
    %c0_i32 = arith.constant 0 : i32
    %1 = vector.broadcast %c0_i32 : i32 to vector<34x128xi32>
    %2 = arith.cmpi sge, %0, %1 : vector<34x128xi32>
    %c16_i32 = arith.constant 16 : i32
    %3 = vector.broadcast %c16_i32 : i32 to vector<34x128xi32>
    %4 = arith.cmpi slt, %0, %3 : vector<34x128xi32>
    %c18_i32 = arith.constant 18 : i32
    %5 = vector.broadcast %c18_i32 : i32 to vector<34x128xi32>
    %6 = arith.cmpi sge, %0, %5 : vector<34x128xi32>
    %7 = arith.ori %4, %6 : vector<34x128xi1>
    %8 = arith.andi %2, %7 : vector<34x128xi1>
    %c0 = arith.constant 0 : index
    %c0_0 = arith.constant 0 : index
    %9 = vector.load %arg0[%c0, %c0_0] : memref<36x128xf32, #tpu.memory_space<vmem>>, vector<34x128xf32>
    %c1 = arith.constant 1 : index
    %c0_1 = arith.constant 0 : index
    %10 = vector.load %arg0[%c1, %c0_1] : memref<36x128xf32, #tpu.memory_space<vmem>>, vector<34x128xf32>
    %c2 = arith.constant 2 : index
    %c0_2 = arith.constant 0 : index
    %11 = vector.load %arg0[%c2, %c0_2] : memref<36x128xf32, #tpu.memory_space<vmem>>, vector<34x128xf32>
    %12 = arith.truncf %9 : vector<34x128xf32> to vector<34x128xbf16>
    %13 = arith.truncf %10 : vector<34x128xf32> to vector<34x128xbf16>
    %14 = arith.truncf %11 : vector<34x128xf32> to vector<34x128xbf16>
    %15 = tpu.concatenate %12, %13, %14 in 1 : vector<34x128xbf16>, vector<34x128xbf16>, vector<34x128xbf16> -> vector<34x384xbf16>
    %c0_3 = arith.constant 0 : index
    %c0_4 = arith.constant 0 : index
    %16 = vector.load %arg1[%c0_3, %c0_4] : memref<384x128xbf16, #tpu.memory_space<vmem>>, vector<384x128xbf16>
    %cst = arith.constant dense<0.000000e+00> : vector<34x128xf32>
    %17 = tpu.matmul %15, %16, %cst {dimension_numbers = #tpu.dot_dimension_numbers<[1], [0], [0], [1], [0, 0, 1, 1], [], []>} : vector<34x384xbf16>, vector<384x128xbf16>, vector<34x128xf32> -> vector<34x128xf32>
    %cst_5 = arith.constant 0.000000e+00 : f32
    %18 = vector.broadcast %cst_5 : f32 to vector<34x128xf32>
    %19 = arith.select %8, %17, %18 : vector<34x128xi1>, vector<34x128xf32>
    %cst_6 = arith.constant dense<0.000000e+00> : vector<128xf32>
    %20 = vector.multi_reduction <add>, %19, %cst_6 [0] : vector<34x128xf32> to vector<128xf32>
    %21 = vector.shape_cast %20 : vector<128xf32> to vector<1x128xf32>
    %22 = arith.mulf %19, %19 : vector<34x128xf32>
    %cst_7 = arith.constant dense<0.000000e+00> : vector<128xf32>
    %23 = vector.multi_reduction <add>, %22, %cst_7 [0] : vector<34x128xf32> to vector<128xf32>
    %24 = vector.shape_cast %23 : vector<128xf32> to vector<1x128xf32>
    %25 = tpu.concatenate %21, %24 in 0 : vector<1x128xf32>, vector<1x128xf32> -> vector<2x128xf32>
    %c0_8 = arith.constant 0 : index
    %c0_9 = arith.constant 0 : index
    %26 = vector.load %arg7[%c0_8, %c0_9] : memref<128x8xf32, #tpu.memory_space<vmem>>, vector<128x8xf32>
    %cst_10 = arith.constant dense<0.000000e+00> : vector<2x8xf32>
    %27 = tpu.matmul %25, %26, %cst_10 {dimension_numbers = #tpu.dot_dimension_numbers<[1], [0], [0], [1], [0, 0, 1, 1], [], []>} : vector<2x128xf32>, vector<128x8xf32>, vector<2x8xf32> -> vector<2x8xf32>
    %cst_11 = arith.constant 0.001953125 : f32
    %28 = vector.broadcast %cst_11 : f32 to vector<2x8xf32>
    %29 = arith.mulf %27, %28 : vector<2x8xf32>
    %30 = vector.extract_strided_slice %29 {offsets = [0, 0], sizes = [1, 8], strides = [1, 1]} : vector<2x8xf32> to vector<1x8xf32>
    %31 = vector.extract_strided_slice %29 {offsets = [1, 0], sizes = [1, 8], strides = [1, 1]} : vector<2x8xf32> to vector<1x8xf32>
    %32 = arith.mulf %30, %30 : vector<1x8xf32>
    %33 = arith.subf %31, %32 : vector<1x8xf32>
    %c0_12 = arith.constant 0 : index
    %c0_13 = arith.constant 0 : index
    %34 = vector.load %arg3[%c0_12, %c0_13] : memref<1x8xf32, #tpu.memory_space<vmem>>, vector<1x8xf32>
    %cst_14 = arith.constant 9.99999974E-6 : f32
    %35 = vector.broadcast %cst_14 : f32 to vector<1x8xf32>
    %36 = arith.addf %33, %35 : vector<1x8xf32>
    %37 = math.rsqrt %36 : vector<1x8xf32>
    %38 = arith.mulf %34, %37 : vector<1x8xf32>
    %c0_15 = arith.constant 0 : index
    %c0_16 = arith.constant 0 : index
    %39 = vector.load %arg4[%c0_15, %c0_16] : memref<1x8xf32, #tpu.memory_space<vmem>>, vector<1x8xf32>
    %40 = arith.mulf %30, %38 : vector<1x8xf32>
    %41 = arith.subf %39, %40 : vector<1x8xf32>
    %42 = tpu.concatenate %38, %41 in 0 : vector<1x8xf32>, vector<1x8xf32> -> vector<2x8xf32>
    %c0_17 = arith.constant 0 : index
    %c0_18 = arith.constant 0 : index
    %43 = vector.load %arg8[%c0_17, %c0_18] : memref<8x128xf32, #tpu.memory_space<vmem>>, vector<8x128xf32>
    %cst_19 = arith.constant dense<0.000000e+00> : vector<2x128xf32>
    %44 = tpu.matmul %42, %43, %cst_19 {dimension_numbers = #tpu.dot_dimension_numbers<[1], [0], [0], [1], [0, 0, 1, 1], [], []>} : vector<2x8xf32>, vector<8x128xf32>, vector<2x128xf32> -> vector<2x128xf32>
    %45 = vector.extract_strided_slice %44 {offsets = [0, 0], sizes = [1, 128], strides = [1, 1]} : vector<2x128xf32> to vector<1x128xf32>
    %46 = vector.broadcast %45 : vector<1x128xf32> to vector<34x128xf32>
    %47 = arith.mulf %17, %46 : vector<34x128xf32>
    %48 = vector.extract_strided_slice %44 {offsets = [1, 0], sizes = [1, 128], strides = [1, 1]} : vector<2x128xf32> to vector<1x128xf32>
    %49 = vector.broadcast %48 : vector<1x128xf32> to vector<34x128xf32>
    %50 = arith.addf %47, %49 : vector<34x128xf32>
    %cst_20 = arith.constant 0.000000e+00 : f32
    %51 = vector.broadcast %cst_20 : f32 to vector<34x128xf32>
    %52 = arith.maximumf %50, %51 : vector<34x128xf32>
    %cst_21 = arith.constant 0.000000e+00 : f32
    %53 = vector.broadcast %cst_21 : f32 to vector<34x128xf32>
    %54 = arith.select %8, %52, %53 : vector<34x128xi1>, vector<34x128xf32>
    %cst_22 = arith.constant 0.000000e+00 : f32
    %55 = vector.broadcast %cst_22 : f32 to vector<1x128xf32>
    %56 = tpu.concatenate %55, %54, %55 in 0 : vector<1x128xf32>, vector<34x128xf32>, vector<1x128xf32> -> vector<36x128xf32>
    %57 = vector.extract_strided_slice %56 {offsets = [0, 0], sizes = [34, 128], strides = [1, 1]} : vector<36x128xf32> to vector<34x128xf32>
    %58 = vector.extract_strided_slice %56 {offsets = [1, 0], sizes = [34, 128], strides = [1, 1]} : vector<36x128xf32> to vector<34x128xf32>
    %59 = vector.extract_strided_slice %56 {offsets = [2, 0], sizes = [34, 128], strides = [1, 1]} : vector<36x128xf32> to vector<34x128xf32>
    %60 = arith.truncf %57 : vector<34x128xf32> to vector<34x128xbf16>
    %61 = arith.truncf %58 : vector<34x128xf32> to vector<34x128xbf16>
    %62 = arith.truncf %59 : vector<34x128xf32> to vector<34x128xbf16>
    %63 = tpu.concatenate %60, %61, %62 in 1 : vector<34x128xbf16>, vector<34x128xbf16>, vector<34x128xbf16> -> vector<34x384xbf16>
    %c0_23 = arith.constant 0 : index
    %c0_24 = arith.constant 0 : index
    %64 = vector.load %arg2[%c0_23, %c0_24] : memref<384x128xbf16, #tpu.memory_space<vmem>>, vector<384x128xbf16>
    %cst_25 = arith.constant dense<0.000000e+00> : vector<34x128xf32>
    %65 = tpu.matmul %63, %64, %cst_25 {dimension_numbers = #tpu.dot_dimension_numbers<[1], [0], [0], [1], [0, 0, 1, 1], [], []>} : vector<34x384xbf16>, vector<384x128xbf16>, vector<34x128xf32> -> vector<34x128xf32>
    %cst_26 = arith.constant 0.000000e+00 : f32
    %66 = vector.broadcast %cst_26 : f32 to vector<34x128xf32>
    %67 = arith.select %8, %65, %66 : vector<34x128xi1>, vector<34x128xf32>
    %cst_27 = arith.constant dense<0.000000e+00> : vector<128xf32>
    %68 = vector.multi_reduction <add>, %67, %cst_27 [0] : vector<34x128xf32> to vector<128xf32>
    %69 = vector.shape_cast %68 : vector<128xf32> to vector<1x128xf32>
    %70 = arith.mulf %67, %67 : vector<34x128xf32>
    %cst_28 = arith.constant dense<0.000000e+00> : vector<128xf32>
    %71 = vector.multi_reduction <add>, %70, %cst_28 [0] : vector<34x128xf32> to vector<128xf32>
    %72 = vector.shape_cast %71 : vector<128xf32> to vector<1x128xf32>
    %73 = tpu.concatenate %69, %72 in 0 : vector<1x128xf32>, vector<1x128xf32> -> vector<2x128xf32>
    %c0_29 = arith.constant 0 : index
    %c0_30 = arith.constant 0 : index
    %74 = vector.load %arg7[%c0_29, %c0_30] : memref<128x8xf32, #tpu.memory_space<vmem>>, vector<128x8xf32>
    %cst_31 = arith.constant dense<0.000000e+00> : vector<2x8xf32>
    %75 = tpu.matmul %73, %74, %cst_31 {dimension_numbers = #tpu.dot_dimension_numbers<[1], [0], [0], [1], [0, 0, 1, 1], [], []>} : vector<2x128xf32>, vector<128x8xf32>, vector<2x8xf32> -> vector<2x8xf32>
    %cst_32 = arith.constant 0.001953125 : f32
    %76 = vector.broadcast %cst_32 : f32 to vector<2x8xf32>
    %77 = arith.mulf %75, %76 : vector<2x8xf32>
    %78 = vector.extract_strided_slice %77 {offsets = [0, 0], sizes = [1, 8], strides = [1, 1]} : vector<2x8xf32> to vector<1x8xf32>
    %79 = vector.extract_strided_slice %77 {offsets = [1, 0], sizes = [1, 8], strides = [1, 1]} : vector<2x8xf32> to vector<1x8xf32>
    %80 = arith.mulf %78, %78 : vector<1x8xf32>
    %81 = arith.subf %79, %80 : vector<1x8xf32>
    %c0_33 = arith.constant 0 : index
    %c0_34 = arith.constant 0 : index
    %82 = vector.load %arg5[%c0_33, %c0_34] : memref<1x8xf32, #tpu.memory_space<vmem>>, vector<1x8xf32>
    %cst_35 = arith.constant 9.99999974E-6 : f32
    %83 = vector.broadcast %cst_35 : f32 to vector<1x8xf32>
    %84 = arith.addf %81, %83 : vector<1x8xf32>
    %85 = math.rsqrt %84 : vector<1x8xf32>
    %86 = arith.mulf %82, %85 : vector<1x8xf32>
    %c0_36 = arith.constant 0 : index
    %c0_37 = arith.constant 0 : index
    %87 = vector.load %arg6[%c0_36, %c0_37] : memref<1x8xf32, #tpu.memory_space<vmem>>, vector<1x8xf32>
    %88 = arith.mulf %78, %86 : vector<1x8xf32>
    %89 = arith.subf %87, %88 : vector<1x8xf32>
    %90 = tpu.concatenate %86, %89 in 0 : vector<1x8xf32>, vector<1x8xf32> -> vector<2x8xf32>
    %c0_38 = arith.constant 0 : index
    %c0_39 = arith.constant 0 : index
    %91 = vector.load %arg8[%c0_38, %c0_39] : memref<8x128xf32, #tpu.memory_space<vmem>>, vector<8x128xf32>
    %cst_40 = arith.constant dense<0.000000e+00> : vector<2x128xf32>
    %92 = tpu.matmul %90, %91, %cst_40 {dimension_numbers = #tpu.dot_dimension_numbers<[1], [0], [0], [1], [0, 0, 1, 1], [], []>} : vector<2x8xf32>, vector<8x128xf32>, vector<2x128xf32> -> vector<2x128xf32>
    %93 = vector.extract_strided_slice %92 {offsets = [0, 0], sizes = [1, 128], strides = [1, 1]} : vector<2x128xf32> to vector<1x128xf32>
    %94 = vector.broadcast %93 : vector<1x128xf32> to vector<34x128xf32>
    %95 = arith.mulf %65, %94 : vector<34x128xf32>
    %96 = vector.extract_strided_slice %92 {offsets = [1, 0], sizes = [1, 128], strides = [1, 1]} : vector<2x128xf32> to vector<1x128xf32>
    %97 = vector.broadcast %96 : vector<1x128xf32> to vector<34x128xf32>
    %98 = arith.addf %95, %97 : vector<34x128xf32>
    %c1_41 = arith.constant 1 : index
    %c0_42 = arith.constant 0 : index
    %99 = vector.load %arg0[%c1_41, %c0_42] : memref<36x128xf32, #tpu.memory_space<vmem>>, vector<34x128xf32>
    %100 = arith.addf %98, %99 : vector<34x128xf32>
    %cst_43 = arith.constant 0.000000e+00 : f32
    %101 = vector.broadcast %cst_43 : f32 to vector<34x128xf32>
    %102 = arith.maximumf %100, %101 : vector<34x128xf32>
    %c0_44 = arith.constant 0 : index
    %c0_45 = arith.constant 0 : index
    %103 = vector.load %arg9[%c0_44, %c0_45] : memref<34x128xf32, #tpu.memory_space<vmem>>, vector<34x128xf32>
    tpu.vector_store %arg9[%c0_44, %c0_45], %102 {strides = array<i32>} : memref<34x128xf32, #tpu.memory_space<vmem>>, vector<34x128xf32>,
    return
  }
}

</mosaic_0001>

<bundles_post_ra>
// kernel: tpu_custom_call.1
= control target key start
LH: loop header
LB: loop body
LE: loop exit
PB: predicated region body
PF: predicated region fallthrough
CT: control target
= control target key end

     0   :  { %14 = vsyncpa [#allocation3], 0  ;;  %s2240_s0 = inlined_call_operand.vmem [shape: f32[36,128], index: 0, kind: input, shape index: {}]   ;;  %s2241_s1 = inlined_call_operand.hbm [shape: bf16[384,128], index: 1, kind: input, shape index: {}]   ;;  %s2242_s2 = inlined_call_operand.hbm [shape: bf16[384,128], index: 2, kind: input, shape index: {}]   ;;  %s2243_s3 = inlined_call_operand.vmem [shape: f32[1,8], index: 3, kind: input, shape index: {}]   ;;  %s2244_s4 = inlined_call_operand.vmem [shape: f32[1,8], index: 4, kind: input, shape index: {}]   ;;  %s2245_s5 = inlined_call_operand.vmem [shape: f32[1,8], index: 5, kind: input, shape index: {}]   ;;  %s2246_s6 = inlined_call_operand.vmem [shape: f32[1,8], index: 6, kind: input, shape index: {}]   ;;  %s2247_s7 = inlined_call_operand.vmem [shape: f32[128,8], index: 7, kind: input, shape index: {}]   ;;  %s2248_s8 = inlined_call_operand.vmem [shape: f32[8,128], index: 8, kind: input, shape index: {}]   ;;  %s2249_s9 = inlined_call_operand.hbm [shape: f32[34,128], index: 9, kind: output, shape index: {}]  }
   0x1   :  { %15 = vsyncpa [#allocation6], 0 }
   0x2   :  { %16 = vsyncpa [#allocation4], 0  ;;  %s1819_s30 = smov [#allocation2]   ;;  %s1747_s13 = scalar_lea.hbm %s2241_s1, 3072 }
   0x3   :  { %s24_s10 = sshll.u32 %s1819_s30, 4  ;;  %p1748_p0 = scmp.ne.s32.totalorder %s2241_s1, %s1747_s13  ;;  %s25_s10 = int_to_ptr.vmem [resolvable:$true] %s24_s10 }
   0x4   :  { %p1751_p1 = scmp.lt.u32.totalorder %s1747_s13, %s2241_s1 }
   0x6   :  { %p1753_p2 = pnand %p1751_p1, %p1748_p0 }
   0x8   :  { %1756 = shalt.err (!%p1753_p2)
}
   0x9   :  { %s1757_s18 = scalar_lea.vmem %s25_s10, 3072  ;;  %p1762_p4 = scmp.lt.s32.totalorder %s25_s10, %s25_s10 }
   0xa   :  { %p1758_p3 = scmp.ne.s32.totalorder %s25_s10, %s1757_s18  ;;  %p1763_p5 = scmp.lt.s32.totalorder %s1757_s18, %s1757_s18 }
   0xc   :  { %p1764_p6 = por %p1763_p5, %p1762_p4 }
   0xe   :  { %p1765_p7 = pnand %p1764_p6, %p1758_p3 }
  0x10   :  { %1768 = shalt.err (!%p1765_p7)
}
  0x11   :  { %s1820_s19 = smov 64   ;;  %s1821_s20 = smov 4  }
  0x12   :  { %30 = dma.hbm_to_vmem [thread:$0]  %s2241_s1, 3072, %s25_s10, [#allocation3], %s1820_s19, %s1820_s19, %s1821_s20  }
  0x13   :  { %s1822_s23 = smov [#allocation5]   ;;  %s1769_s27 = scalar_lea.hbm %s2242_s2, 3072 }
  0x14   :  { %s36_s24 = sshll.u32 %s1822_s23, 4  ;;  %p1770_p8 = scmp.ne.s32.totalorder %s2242_s2, %s1769_s27  ;;  %s37_s24 = int_to_ptr.vmem [resolvable:$true] %s36_s24 }
  0x15   :  { %p1773_p9 = scmp.lt.u32.totalorder %s1769_s27, %s2242_s2 }
  0x17   :  { %p1775_p10 = pnand %p1773_p9, %p1770_p8 }
  0x19   :  { %1778 = shalt.err (!%p1775_p10)
}
  0x1a   :  { %s1779_s12 = scalar_lea.vmem %s37_s24, 3072  ;;  %p1784_p12 = scmp.lt.s32.totalorder %s37_s24, %s37_s24 }
  0x1b   :  { %p1780_p11 = scmp.ne.s32.totalorder %s37_s24, %s1779_s12  ;;  %p1785_p13 = scmp.lt.s32.totalorder %s1779_s12, %s1779_s12 }
  0x1d   :  { %p1786_p0 = por %p1785_p13, %p1784_p12 }
  0x1f   :  { %p1787_p1 = pnand %p1786_p0, %p1780_p11 }
  0x21   :  { %1790 = shalt.err (!%p1787_p1)
}
  0x22   :  { %42 = dma.hbm_to_vmem [thread:$0]  %s2242_s2, 3072, %s37_s24, [#allocation6], %s1820_s19, %s1820_s19, %s1821_s20  }
  0x23   :  { %1813 = dma.done.wait [#allocation3], 3072  }
  0x24   :  { %1814 = vsyncadd [#allocation3], 4294964224 }
  0x25   :  { %1815 = dma.done.wait [#allocation6], 3072  }
  0x26   :  { %1816 = vsyncadd [#allocation6], 4294964224  ;;  %v1823_v0 = vmov 0.0   ;;  %vm1824_vm0 = vmmov 0   ;;  %v1695_v1 = vld [vmem:[#allocation2 + $0x40] sm:$0xff]   ;;  %v1698_v4 = vld [vmem:[#allocation2 + $0x48] sm:$0xff]  }
  0x27   :  { %1499 = vmatprep.subr.bf16.mxu1 %v1823_v0  ;;  %1515 = vmatprep.mubr.msk.bf16.mxu1 %vm1824_vm0, %v1823_v0  ;;  %v1696_v2 = vld [vmem:[#allocation2] sm:$0xff]   ;;  %v1699_v5 = vld [vmem:[#allocation2 + $0x8] sm:$0xff]   ;;  %v1701_v7 = vld [vmem:[#allocation2 + $0x50] sm:$0xff]   ;;  %v1825_v52 = vmov 0.0|0.0   ;;  %vm429_vm2 = vcmask 1041408   ;;  %vm454_vm3 = vcmask 1040384  }
  0x28   :  { %1371 = vmatprep.subr.bf16.mxu0 %v1695_v1  ;;  %v1697_v3 = vld [vmem:[#allocation2 + $0x80] sm:$0xff]   ;;  %v1700_v6 = vld [vmem:[#allocation2 + $0x88] sm:$0xff]   ;;  %v1702_v8 = vld [vmem:[#allocation2 + $0x10] sm:$0xff]   ;;  %vm580_vm4 = vcmask 64512   ;;  %vm702_vm5 = vcmask 1042432   ;;  %vm737_vm6 = vcmask 1046528  }
  0x29   :  { %1372 = vmatpush3.bf16.msra.mxu0 %v1696_v2  ;;  %1500 = vmatpush3.bf16.msra.mxu1 %v1697_v3  ;;  %v1703_v9 = vld [vmem:[#allocation2 + $0x90] sm:$0xff]   ;;  %v1704_v10 = vld [vmem:[#allocation2 + $0x58] sm:$0xff]   ;;  %v1707_v13 = vld [vmem:[#allocation2 + $0x60] sm:$0xff]   ;;  %vm707_vm7 = vsmask.f32 7424  ;;  %vm1827_vm9 = vmmov 1  }
  0x2a   :  { %1373 = vmatprep.subr.bf16.mxu0 %v1698_v4  ;;  %1501 = vmatprep.subr.bf16.mxu1 %v1823_v0  ;;  %v1705_v11 = vld [vmem:[#allocation2 + $0x18] sm:$0xff]   ;;  %v1708_v14 = vld [vmem:[#allocation2 + $0x20] sm:$0xff]   ;;  %v1710_v16 = vld [vmem:[#allocation2 + $0x68] sm:$0xff]  }
  0x2b   :  { %v1706_v12 = vld [vmem:[#allocation2 + $0x98] sm:$0xff]   ;;  %v1709_v15 = vld [vmem:[#allocation2 + $0xa0] sm:$0xff]   ;;  %v1711_v17 = vld [vmem:[#allocation2 + $0x28] sm:$0xff]  }
  0x2c   :  { %v1712_v18 = vld [vmem:[#allocation2 + $0xa8] sm:$0xff]   ;;  %v1713_v19 = vld [vmem:[#allocation2 + $0x70] sm:$0xff]   ;;  %v1716_v22 = vld [vmem:[#allocation2 + $0x78] sm:$0xff]  }
  0x2d   :  { %1374 = vmatpush3.bf16.msra.mxu0 %v1699_v5  ;;  %1502 = vmatpush3.bf16.msra.mxu1 %v1700_v6  ;;  %v1714_v20 = vld [vmem:[#allocation2 + $0x30] sm:$0xff]   ;;  %v1916_v23 = vld [vmem:[%s2240_s0 + $0x1] sm:$0xff]  ;;  %v1717_v26 = vld [vmem:[#allocation2 + $0x38] sm:$0xff]  }
  0x2e   :  { %1375 = vmatprep.subr.bf16.mxu0 %v1701_v7  ;;  %1503 = vmatprep.subr.bf16.mxu1 %v1823_v0  ;;  %v1715_v21 = vld [vmem:[#allocation2 + $0xb0] sm:$0xff]   ;;  %v1718_v27 = vld [vmem:[#allocation2 + $0xb8] sm:$0xff]   ;;  %v93_v28 = vld [vmem:[%s2240_s0] sm:$0xff] }
  0x2f   :  { %v1921_v24 = vld [vmem:[%s2240_s0 + $0x9] sm:$0xff]  ;;  %v1941_v32 = vld [vmem:[%s2240_s0 + $0x11] sm:$0xff]  ;;  %v1946_v33 = vld [vmem:[%s2240_s0 + $0x19] sm:$0xff] }
  0x30   :  { %v111_v25 = vpack.c.bf16 %v1921_v24, %v1916_v23  ;;  %v94_v29 = vld [vmem:[%s2240_s0 + $0x8] sm:$0xff]  ;;  %v112_v36 = vpack.c.bf16 %v1946_v33, %v1941_v32  ;;  %v95_v37 = vld [vmem:[%s2240_s0 + $0x10] sm:$0xff]  ;;  %v96_v38 = vld [vmem:[%s2240_s0 + $0x18] sm:$0xff] }
  0x31   :  { %1376 = vmatpush3.bf16.msra.mxu0 %v1702_v8  ;;  %1504 = vmatpush3.bf16.msra.mxu1 %v1703_v9  ;;  %v103_v30 = vld [vmem:[%s2240_s0 + $0x2] sm:$0xff]  ;;  %v104_v31 = vld [vmem:[%s2240_s0 + $0xa] sm:$0xff]  ;;  %v108_v34 = vpack.c.bf16 %v94_v29, %v93_v28  ;;  %v105_v39 = vld [vmem:[%s2240_s0 + $0x12] sm:$0xff]  ;;  %v109_v42 = vpack.c.bf16 %v96_v38, %v95_v37 }
  0x32   :  { %1377 = vmatprep.subr.bf16.mxu0 %v1704_v10  ;;  %1505 = vmatprep.subr.bf16.mxu1 %v1823_v0  ;;  %v114_v35 = vpack.c.bf16 %v104_v31, %v103_v30  ;;  %v106_v40 = vld [vmem:[%s2240_s0 + $0x1a] sm:$0xff]  ;;  %v107_v46 = vld [vmem:[%s2240_s0 + $0x22] sm:$0x3]  ;;  %v457_v50 = vld [vmem:[%s2247_s7 + $0x8] sm:$0xff] }
  0x33   :  { %341 = vmatprep.mubr.bf16.mxu0 %v111_v25  ;;  %v1967_v41 = vld [vmem:[%s2240_s0 + $0x21] sm:$0x3]  ;;  %v115_v43 = vpack.c.bf16 %v106_v40, %v105_v39  ;;  %v116_v48 = vpack.c.bf16 %v107_v46, %v107_v46  ;;  %v458_v53 = vld [vmem:[%s2247_s7 + $0x10] sm:$0xff]  ;;  %v459_v54 = vld [vmem:[%s2247_s7 + $0x18] sm:$0xff] }
  0x34   :  { %v113_v44 = vpack.c.bf16 %v1967_v41, %v1967_v41  ;;  %v97_v45 = vld [vmem:[%s2240_s0 + $0x20] sm:$0x3]  ;;  %v2002_v55 = vpack.c.bf16 %v459_v54, %v458_v53  ;;  %v461_v57 = vld [vmem:[%s2247_s7 + $0x28] sm:$0xff]  ;;  %v462_v59 = vld [vmem:[%s2247_s7 + $0x30] sm:$0xff] }
  0x35   :  { %1378 = vmatpush3.bf16.msra.mxu0 %v1705_v11  ;;  %1506 = vmatpush3.bf16.msra.mxu1 %v1706_v12  ;;  %v110_v47 = vpack.c.bf16 %v97_v45, %v97_v45  ;;  %v456_v49 = vld [vmem:[%s2247_s7] sm:$0xff]  ;;  %v463_v60 = vld [vmem:[%s2247_s7 + $0x38] sm:$0xff]  ;;  %v465_v63 = vld [vmem:[%s2247_s7 + $0x48] sm:$0xff]  ;;  %v62_v11 = vlaneseq }
  0x36   :  { %1379 = vmatprep.subr.bf16.mxu0 %v1707_v13  ;;  %1507 = vmatprep.subr.bf16.mxu1 %v1823_v0  ;;  %v1991_v51 = vpack.c.bf16 %v457_v50, %v456_v49  ;;  %v460_v56 = vld [vmem:[%s2247_s7 + $0x20] sm:$0xff]  ;;  %v2022_v61 = vpack.c.bf16 %v463_v60, %v462_v59  ;;  %v466_v2 = vld [vmem:[%s2247_s7 + $0x50] sm:$0xff]  ;;  %v467_v3 = vld [vmem:[%s2247_s7 + $0x58] sm:$0xff] }
  0x37   :  { %v2012_v58 = vpack.c.bf16 %v461_v57, %v460_v56  ;;  %v464_v62 = vld [vmem:[%s2247_s7 + $0x40] sm:$0xff]  ;;  %v2042_v4 = vpack.c.bf16 %v467_v3, %v466_v2  ;;  %v469_v6 = vld [vmem:[%s2247_s7 + $0x68] sm:$0xff]  ;;  %v470_v7 = vld [vmem:[%s2247_s7 + $0x70] sm:$0xff] }
  0x38   :  { %v2032_v1 = vpack.c.bf16 %v465_v63, %v464_v62  ;;  %v468_v5 = vld [vmem:[%s2247_s7 + $0x60] sm:$0xff]  ;;  %v471_v9 = vld [vmem:[%s2247_s7 + $0x78] sm:$0xff]  ;;  %vm1363_vm8 = vmneg %vm454_vm3 }
  0x39   :  { %1380 = vmatpush3.bf16.msra.mxu0 %v1708_v14  ;;  %1508 = vmatpush3.bf16.msra.mxu1 %v1709_v15  ;;  %v2055_v8 = vpack.c.bf16 %v469_v6, %v468_v5  ;;  %v2061_v10 = vpack.c.bf16 %v471_v9, %v470_v7  ;;  %vm1364_vm10 = vmpackc.low %vm1827_vm9, %vm1363_vm8 }
  0x3a   :  { %1381 = vmatprep.subr.bf16.mxu0 %v1710_v16  ;;  %1509 = vmatprep.subr.bf16.mxu1 %v1823_v0  ;;  %vm1367_vm11 = vmpackc.low %vm702_vm5, %vm702_vm5 }
  0x3d   :  { %1382 = vmatpush3.bf16.msra.mxu0 %v1711_v17  ;;  %1510 = vmatpush3.bf16.msra.mxu1 %v1712_v18 }
  0x3e   :  { %1383 = vmatprep.subr.bf16.mxu0 %v1713_v19  ;;  %1511 = vmatprep.subr.bf16.mxu1 %v1823_v0 }
  0x41   :  { %1384 = vmatpush3.bf16.msra.mxu0 %v1714_v20  ;;  %1512 = vmatpush3.bf16.msra.mxu1 %v1715_v21  ;;  %v2066_v20 = vshrl.u32 %v62_v11, 7 }
  0x42   :  { %1385 = vmatprep.subr.bf16.mxu0 %v1716_v22  ;;  %1513 = vmatprep.subr.bf16.mxu1 %v1823_v0 }
  0x45   :  { %1386 = vmatpush3.bf16.msra.mxu0 %v1717_v26  ;;  %1514 = vmatpush3.bf16.msra.mxu1 %v1718_v27  ;;  %v2073_v27 = vadd.s32 16, %v2066_v20 }
  0x46   :  { %1562 = vmatprep.subr.mxu1 %v1823_v0  ;;  %1635 = vmatprep.subr.bf16.mxu0 %v1825_v52 }
  0x47   :  { %vm80_vm1 = vcmp.ge.s32.totalorder %v2073_v27, 18 }
  0x48   :  { %342 = vmatmul.mubr.bf16.vlgmr.msra.gmra.mrb[0].mxu0 %v108_v34  ;;  %1516 = vmatmul.mubr.bf16.vlgmr.msra.gmra.mrb[0].mxu1 %v114_v35 }
  0x49   :  { %349 = vmatprep.mubr.bf16.mxu0 %v112_v36  ;;  %1519 = vmatprep.mubr.msk.bf16.mxu1 %vm1824_vm0, %v1823_v0 }
  0x4a   :  { %1637 = vmatpush3.bf16.msra.mxu0 %v1991_v51 }
  0x4b   :  { %1638 = vmatprep.subr.bf16.mxu0 %v1825_v52 }
  0x4e   :  { %1640 = vmatpush3.bf16.msra.mxu0 %v2002_v55 }
  0x4f   :  { %1641 = vmatprep.subr.bf16.mxu0 %v1825_v52 }
  0x50   :  { %350 = vmatmul.mubr.bf16.gmra.mrb[4].mxu0 %v109_v42  ;;  %1520 = vmatmul.mubr.bf16.gmra.mrb[4].mxu1 %v115_v43 }
  0x51   :  { %357 = vmatprep.mubr.bf16.mxu0 %v113_v44  ;;  %1523 = vmatprep.mubr.msk.bf16.mxu1 %vm1824_vm0, %v1823_v0 }
  0x52   :  { %1643 = vmatpush3.bf16.msra.mxu0 %v2012_v58 }
  0x53   :  { %1644 = vmatprep.subr.bf16.mxu0 %v1825_v52 }
  0x56   :  { %1646 = vmatpush3.bf16.msra.mxu0 %v2022_v61 }
  0x57   :  { %1647 = vmatprep.subr.bf16.mxu0 %v1825_v52 }
  0x58   :  { %358 = vmatmul.mubr.bf16.gmra.mrb[8].mxu0 %v110_v47  ;;  %1524 = vmatmul.mubr.bf16.gmra.mrb[8].mxu1 %v116_v48 }
  0x59   :  { %1559 = vmatprep.mubr.msk.f32.mxu0 %vm1824_vm0, %v1823_v0  ;;  %1564 = vmatprep.mubr.msk.f32.mxu1 %vm1824_vm0, %v1823_v0 }
  0x5a   :  { %1649 = vmatpush3.bf16.msra.mxu0 %v2032_v1 }
  0x5b   :  { %1650 = vmatprep.subr.bf16.mxu0 %v1825_v52 }
  0x5e   :  { %1652 = vmatpush3.bf16.msra.mxu0 %v2042_v4 }
  0x5f   :  { %1653 = vmatprep.subr.bf16.mxu0 %v1825_v52 }
  0x62   :  { %1655 = vmatpush3.bf16.msra.mxu0 %v2055_v8 }
  0x63   :  { %1656 = vmatprep.subr.bf16.mxu0 %v1825_v52 }
  0x66   :  { %1658 = vmatpush3.bf16.msra.mxu0 %v2061_v10 }
  0x67   :  { %1567 = vmatprep.subr.bf16.mxu0 %v1823_v0 }
 0x11b   :  { %v1387_v12 = vpop.f32.mrb[0].mxu0  ;;  %v399_v13 = vpop.f32.mrb[0].mxu1 }
 0x11c   :  { %v1388_v14 = vpop.f32.mrb[1].mxu0  ;;  %v1517_v16 = vpop.f32.mrb[1].mxu1 }
 0x11d   :  { %v1389_v15 = vadd.f32 %v1388_v14, %v1387_v12  ;;  %v1390_v17 = vpop.f32.mrb[2].mxu0  ;;  %v402_v18 = vpop.f32.mrb[2].mxu1 }
 0x11e   :  { %v1391_v19 = vpop.f32.mrb[3].mxu0  ;;  %v1518_v25 = vpop.f32.mrb[3].mxu1 }
 0x11f   :  { %v2068_v21 = vadd.f32 %v1389_v15, %v399_v13  ;;  %v1392_v22 = vadd.f32 %v1391_v19, %v1390_v17 }
 0x121   :  { %v2070_v26 = vadd.f32 %v1392_v22, %v402_v18  ;;  %v438_v45 = vmul.f32 %v2068_v21, %v2068_v21 }
 0x123   :  { %v1393_v28 = vpop.f32.mrb[4].mxu0  ;;  %v407_v29 = vpop.f32.mrb[4].mxu1  ;;  %v439_v42 = vmul.f32 %v2070_v26, %v2070_v26  ;;  %v426_v46 = vadd.f32 %v2070_v26, %v2068_v21 }
 0x124   :  { %v1394_v30 = vpop.f32.mrb[5].mxu0  ;;  %v1521_v34 = vpop.f32.mrb[5].mxu1 }
 0x125   :  { %v1395_v31 = vadd.f32 %v1394_v30, %v1393_v28  ;;  %v1396_v35 = vpop.f32.mrb[6].mxu0  ;;  %v410_v36 = vpop.f32.mrb[6].mxu1  ;;  %v443_v49 = vadd.f32 %v439_v42, %v438_v45  ;;  %v1725_v42 = vld [vmem:[#allocation5 + $0x90] sm:$0xff]  }
 0x126   :  { %v1397_v37 = vpop.f32.mrb[7].mxu0  ;;  %v1522_v40 = vpop.f32.mrb[7].mxu1 }
 0x127   :  { %v2076_v38 = vadd.f32 %v1395_v31, %v407_v29  ;;  %v1398_v39 = vadd.f32 %v1397_v37, %v1396_v35  ;;  %v1719_v37 = vld [vmem:[#allocation5 + $0x80] sm:$0xff]   ;;  %v1722_v40 = vld [vmem:[#allocation5 + $0x88] sm:$0xff]  }
 0x129   :  { %v423_v43 = vsel %vm80_vm1, %v2076_v38, 0.0  ;;  %v2083_v44 = vadd.f32 %v1398_v39, %v410_v36  ;;  %v2105_v36 = vld [vmem:[%s2248_s8] sm:$0xff] }
 0x12a   :  { %v440_v47 = vmul.f32 %v423_v43, %v423_v43  ;;  %v427_v50 = vadd.f32 %v426_v46, %v423_v43  ;;  %1563 = vmatpush3.msra.mxu1 %v2105_v36  ;;  %v1720_v39 = vld [vmem:[#allocation5 + $0x40] sm:$0xff]   ;;  %v1728_v43 = vld [vmem:[#allocation5 + $0x98] sm:$0xff]  }
 0x12b   :  { %v1399_v48 = vpop.f32.mrb[8].mxu0  ;;  %v415_v53 = vpop.f32.mrb[8].mxu1  ;;  %v441_v62 = vmul.f32 %v2083_v44, %v2083_v44  ;;  %1435 = vmatprep.subr.bf16.mxu1 %v1720_v39  ;;  %v1738_v39 = vld [vmem:[#allocation5 + $0x70] sm:$0xff]  }
 0x12c   :  { %v1400_v54 = vpop.f32.mrb[9].mxu0  ;;  %v1525_v57 = vpop.f32.mrb[9].mxu1  ;;  %v444_v60 = vadd.f32 %v443_v49, %v440_v47  ;;  %v428_v6 = vadd.f32 %v427_v50, %v2083_v44 }
 0x12d   :  { %v1401_v56 = vadd.f32 %v1400_v54, %v1399_v48  ;;  %v1402_v59 = vpop.f32.mrb[10].mxu0  ;;  %v418_v63 = vpop.f32.mrb[10].mxu1  ;;  %v1826_v54 = vmov 1966171168  }
 0x12e   :  { %v1403_v2 = vpop.f32.mrb[11].mxu0  ;;  %v1526_v5 = vpop.f32.mrb[11].mxu1  ;;  %v445_v11 = vadd.f32 %v444_v60, %v441_v62 }
 0x12f   :  { %v2091_v3 = vadd.f32 %v1401_v56, %v415_v53  ;;  %v553_v56 = vunpack.c.l.s4 %v1826_v54  ;;  %v548_v2 = vld [vmem:[%s2243_s3] sm:$0x1] }
 0x131   :  { %v430_v7 = vsel %vm429_vm2, %v2091_v3, 0.0  ;;  %v442_v9 = vmul.f32 %v2091_v3, %v2091_v3  ;;  %v554_v57 = vunpack.c.0.s8 %v553_v56 }
 0x132   :  { %v431_v12 = vadd.f32 %v430_v7, %v428_v6  ;;  %v569_v7 = vld [vmem:[%s2244_s4] sm:$0x1] }
 0x133   :  { %v446_v13 = vsel %vm429_vm2, %v442_v9, 0.0  ;;  %v2113_v59 = vsub.s32 %v554_v57, %v2066_v20 }
 0x134   :  { %v432_v14 = vrot.slane %v431_v12, 4  ;;  %v447_v15 = vadd.f32 %v446_v13, %v445_v11  ;;  %v2124_v11 = vsub.s32 0, %v2066_v20 }
 0x136   :  { %v433_v16 = vadd.f32 %v432_v14, %v431_v12  ;;  %v448_v17 = vrot.slane %v447_v15, 4  ;;  %v1721_v14 = vld [vmem:[#allocation5] sm:$0xff]  }
 0x138   :  { %v434_v18 = vrot.slane %v433_v16, 2  ;;  %v449_v19 = vadd.f32 %v448_v17, %v447_v15  ;;  %v1723_v15 = vld [vmem:[#allocation5 + $0x48] sm:$0xff]  }
 0x139   :  { %v1724_v17 = vld [vmem:[#allocation5 + $0x8] sm:$0xff]  }
 0x13a   :  { %v435_v22 = vadd.f32 %v434_v18, %v433_v16  ;;  %v450_v25 = vrot.slane %v449_v19, 2  ;;  %v1726_v18 = vld [vmem:[#allocation5 + $0x50] sm:$0xff]  }
 0x13c   :  { %v436_v28 = vrot.slane %v435_v22, 1  ;;  %v451_v29 = vadd.f32 %v450_v25, %v449_v19  ;;  %v1727_v19 = vld [vmem:[#allocation5 + $0x10] sm:$0xff]   ;;  %v1730_v25 = vld [vmem:[#allocation5 + $0x18] sm:$0xff]  }
 0x13e   :  { %v452_v30 = vrot.slane %v451_v29, 1  ;;  %v437_v31 = vadd.f32 %v436_v28, %v435_v22  ;;  %v1729_v22 = vld [vmem:[#allocation5 + $0x58] sm:$0xff]   ;;  %v1731_v28 = vld [vmem:[#allocation5 + $0xa0] sm:$0xff]  }
 0x140   :  { %v453_v34 = vadd.f32 %v452_v30, %v451_v29  ;;  %v1732_v29 = vld [vmem:[#allocation5 + $0x60] sm:$0xff]  }
 0x141   :  { %v1733_v30 = vld [vmem:[#allocation5 + $0x20] sm:$0xff]  }
 0x142   :  { %v455_v35 = vsel %vm454_vm3, %v437_v31, %v453_v34  ;;  %v1734_v31 = vld [vmem:[#allocation5 + $0xa8] sm:$0xff]  }
 0x143   :  { %1560 = vmatmul.mubr.f32.vlgmr.msra.gmra.mrb[12].mxu0 %v455_v35  ;;  %v1735_v34 = vld [vmem:[#allocation5 + $0x68] sm:$0xff]  }
 0x144   :  { %1583 = vmatprep.mubr.msk.bf16.mxu0 %vm1824_vm0, %v1823_v0  ;;  %1568 = vmatpush3.bf16.msra.mxu0 %v1719_v37  ;;  %v1736_v35 = vld [vmem:[#allocation5 + $0x28] sm:$0xff]   ;;  %v1737_v37 = vld [vmem:[#allocation5 + $0xb0] sm:$0xff]  }
 0x145   :  { %1569 = vmatprep.subr.bf16.mxu0 %v1823_v0 }
 0x148   :  { %1570 = vmatpush3.bf16.msra.mxu0 %v1722_v40  ;;  %v1739_v40 = vld [vmem:[#allocation5 + $0x30] sm:$0xff]  }
 0x149   :  { %1571 = vmatprep.subr.bf16.mxu0 %v1823_v0 }
 0x14c   :  { %1572 = vmatpush3.bf16.msra.mxu0 %v1725_v42  ;;  %v1740_v42 = vld [vmem:[#allocation5 + $0xb8] sm:$0xff]  }
 0x14d   :  { %1573 = vmatprep.subr.bf16.mxu0 %v1823_v0 }
 0x150   :  { %1574 = vmatpush3.bf16.msra.mxu0 %v1728_v43  ;;  %v1741_v43 = vld [vmem:[#allocation5 + $0x78] sm:$0xff]  }
 0x151   :  { %1575 = vmatprep.subr.bf16.mxu0 %v1823_v0 }
 0x154   :  { %1576 = vmatpush3.bf16.msra.mxu0 %v1731_v28 }
 0x155   :  { %1577 = vmatprep.subr.bf16.mxu0 %v1823_v0 }
 0x158   :  { %1578 = vmatpush3.bf16.msra.mxu0 %v1734_v31 }
 0x159   :  { %1579 = vmatprep.subr.bf16.mxu0 %v1823_v0 }
 0x15c   :  { %1580 = vmatpush3.bf16.msra.mxu0 %v1737_v37 }
 0x15d   :  { %1581 = vmatprep.subr.bf16.mxu0 %v1823_v0 }
 0x160   :  { %1582 = vmatpush3.bf16.msra.mxu0 %v1740_v42 }
 0x161   :  { %1630 = vmatprep.subr.mxu0 %v1823_v0 }
 0x216   :  { %v538_v45 = vpop.f32.mrb[12].mxu0 }
 0x217   :  { %v542_v46 = vmul.f32 0.001953125, %v538_v45  ;;  %v1561_v47 = vpop.f32.mrb[13].mxu0  ;;  %v1742_v45 = vld [vmem:[#allocation5 + $0x38] sm:$0xff]  }
 0x219   :  { %v543_v48 = vmul.f32 %v542_v46, %v542_v46 }
 0x21b   :  { %v545_v49 = vrot.slane %v543_v48, 7 }
 0x21d   :  { %v547_v50 = vsub.f32 %v542_v46, %v545_v49 }
 0x21f   :  { %v549_v53 = vadd.f32 1e-05, %v547_v50 }
 0x221   :  { %1743 = vrsqrt.f32 %v549_v53 }
 0x22b   :  { %v1744_v60 = vpop.eup %1743 }
 0x22c   :  { %v558_v62 = vrot.slane %v1744_v60, %v2113_v59 }
 0x22e   :  { %v559_v63 = vcombine.high %v558_v62, %v558_v62 }
 0x230   :  { %v566_v5 = vrot.slane %v559_v63, %v2113_v59 }
 0x232   :  { %v568_v6 = vmul.f32 %v566_v5, %v548_v2 }
 0x234   :  { %v570_v9 = vmul.f32 %v568_v6, %v542_v46  ;;  %v665_v46 = vsub.s32 1, %v2066_v20 }
 0x236   :  { %v571_v12 = vsub.f32 %v569_v7, %v570_v9 }
 0x238   :  { %v576_v13 = vrot.slane %v571_v12, %v2124_v11 }
 0x23a   :  { %v578_v16 = vsel %vm454_vm3, %v568_v6, %v576_v13 }
 0x23b   :  { %1565 = vmatmul.mubr.msk.f32.vlgmr.msra.gmra.mrb[12].mxu1 %vm580_vm4, %v578_v16 }
 0x23c   :  { %1436 = vmatpush3.bf16.msra.mxu1 %v1721_v14 }
 0x23d   :  { %1437 = vmatprep.subr.bf16.mxu1 %v1723_v15 }
 0x240   :  { %1438 = vmatpush3.bf16.msra.mxu1 %v1724_v17 }
 0x241   :  { %1439 = vmatprep.subr.bf16.mxu1 %v1726_v18 }
 0x244   :  { %1440 = vmatpush3.bf16.msra.mxu1 %v1727_v19 }
 0x245   :  { %1441 = vmatprep.subr.bf16.mxu1 %v1729_v22 }
 0x248   :  { %1442 = vmatpush3.bf16.msra.mxu1 %v1730_v25 }
 0x249   :  { %1443 = vmatprep.subr.bf16.mxu1 %v1732_v29 }
 0x24c   :  { %1444 = vmatpush3.bf16.msra.mxu1 %v1733_v30 }
 0x24d   :  { %1445 = vmatprep.subr.bf16.mxu1 %v1735_v34 }
 0x250   :  { %1446 = vmatpush3.bf16.msra.mxu1 %v1736_v35 }
 0x251   :  { %1447 = vmatprep.subr.bf16.mxu1 %v1738_v39 }
 0x254   :  { %1448 = vmatpush3.bf16.msra.mxu1 %v1739_v40 }
 0x255   :  { %1449 = vmatprep.subr.bf16.mxu1 %v1741_v43 }
 0x258   :  { %1450 = vmatpush3.bf16.msra.mxu1 %v1742_v45 }
 0x259   :  { %1659 = vmatprep.subr.bf16.mxu1 %v1825_v52 }
 0x30e   :  { %v650_v47 = vpop.f32.mrb[12].mxu1 }
 0x30f   :  { %v657_v48 = vrot.slane %v650_v47, %v2124_v11  ;;  %v1566_v49 = vpop.f32.mrb[13].mxu1  ;;  %v666_v50 = vrot.slane %v650_v47, %v665_v46 }
 0x311   :  { %v658_v53 = vmul.f32 %v657_v48, %v2068_v21  ;;  %v659_v54 = vmul.f32 %v657_v48, %v2070_v26  ;;  %v660_v56 = vmul.f32 %v657_v48, %v2076_v38  ;;  %v661_v57 = vmul.f32 %v657_v48, %v2083_v44 }
 0x312   :  { %v662_v60 = vmul.f32 %v657_v48, %v2091_v3 }
 0x313   :  { %v667_v62 = vadd.f32 %v666_v50, %v658_v53  ;;  %v668_v63 = vadd.f32 %v666_v50, %v659_v54  ;;  %v669_v2 = vadd.f32 %v666_v50, %v660_v56  ;;  %v670_v5 = vadd.f32 %v666_v50, %v661_v57 }
 0x314   :  { %v671_v6 = vadd.f32 %v666_v50, %v662_v60 }
 0x315   :  { %v672_v7 = vmax.f32 %v667_v62, 0.0  ;;  %v673_v9 = vmax.f32 %v668_v63, 0.0  ;;  %v674_v12 = vmax.f32 %v669_v2, 0.0  ;;  %v675_v13 = vmax.f32 %v670_v5, 0.0 }
 0x316   :  { %v676_v14 = vmax.f32 %v671_v6, 0.0 }
 0x317   :  { %v679_v21 = vsel %vm80_vm1, %v674_v12, 0.0  ;;  %v687_v26 = vrot.slane %v672_v7, 7  ;;  %v688_v15 = vrot.slane %v673_v9, 7  ;;  %v692_v38 = vrot.slane %v675_v13, 7 }
 0x318   :  { %v690_v16 = vrot.slane %v679_v21, 7  ;;  %v694_v44 = vrot.slane %v676_v14, 7 }
 0x319   :  { %v689_v3 = vsel %vm454_vm3, %v687_v26, %v688_v15  ;;  %v701_v17 = vsel %vm454_vm3, 0.0, %v687_v26 }
 0x31a   :  { %v691_v18 = vsel %vm454_vm3, %v688_v15, %v690_v16  ;;  %v693_v19 = vsel %vm454_vm3, %v690_v16, %v692_v38  ;;  %v704_v22 = vpack.c.bf16 %v689_v3, %v701_v17  ;;  %v695_v28 = vsel %vm454_vm3, %v692_v38, %v694_v44 }
 0x31b   :  { %v705_v25 = vpack.c.bf16 %v693_v19, %v691_v18  ;;  %v703_v31 = vsel %vm702_vm5, %v695_v28, 0.0  ;;  %v1365_v54 = vpack.c.bf16 %v689_v3, %v687_v26 }
 0x31c   :  { %v738_v29 = vrot.slane %v704_v22, 1  ;;  %v711_v30 = vshll.u32 %v704_v22, 16  ;;  %v706_v37 = vpack.c.bf16 %v703_v31, %v703_v31  ;;  %v709_v39 = vshrl.u32 %v704_v22, 16 }
 0x31d   :  { %v739_v34 = vrot.slane %v705_v25, 1  ;;  %v716_v35 = vshll.u32 %v705_v25, 16  ;;  %v720_v45 = vshrl.u32 %v705_v25, 16 }
 0x31e   :  { %v713_v40 = vrot.slane %v711_v30, 1  ;;  %v724_v47 = vshll.u32 %v706_v37, 16  ;;  %v741_v57 = vrot.slane %v706_v37, 1  ;;  %v728_v62 = vshrl.u32 %v706_v37, 16 }
 0x31f   :  { %v740_v42 = vsel %vm737_vm6, %v738_v29, %v739_v34  ;;  %v718_v43 = vrot.slane %v716_v35, 1 }
 0x320   :  { %1584 = vmatmul.mubr.bf16.vlgmr.msra.gmra.mrb[16].mxu0 %v740_v42  ;;  %v714_v48 = vor.u32 %v713_v40, %v709_v39  ;;  %v726_v50 = vrot.slane %v724_v47, 1  ;;  %v742_v60 = vsel %vm737_vm6, %v739_v34, %v741_v57 }
 0x321   :  { %v722_v49 = vor.u32 %v720_v45, %v718_v43  ;;  %1587 = vmatprep.mubr.msk.bf16.mxu0 %vm1824_vm0, %v1823_v0  ;;  %1631 = vmatpush3.msra.mxu0 %v2105_v36 }
 0x322   :  { %v719_v53 = vsel %vm707_vm7, %v714_v48, %v718_v43  ;;  %v730_v36 = vor.u32 %v728_v62, %v726_v50 }
 0x323   :  { %970 = vmatprep.mubr.bf16.mxu1 %v719_v53  ;;  %v727_v56 = vsel %vm707_vm7, %v722_v49, %v726_v50 }
 0x324   :  { %1366 = vmatmul.mubr.msk.bf16.vlgmr.msra.gmra.mrb[16].mxu1 %vm1364_vm10, %v1365_v54 }
 0x325   :  { %978 = vmatprep.mubr.bf16.mxu1 %v727_v56  ;;  %1661 = vmatpush3.bf16.msra.mxu1 %v1991_v51  ;;  %v1368_v51 = vpack.c.bf16 %v695_v28, %v695_v28 }
 0x326   :  { %1662 = vmatprep.subr.bf16.mxu1 %v1825_v52 }
 0x328   :  { %1588 = vmatmul.mubr.bf16.gmra.mrb[20].mxu0 %v742_v60 }
 0x329   :  { %1591 = vmatprep.mubr.msk.bf16.mxu0 %vm1824_vm0, %v1823_v0  ;;  %1664 = vmatpush3.bf16.msra.mxu1 %v2002_v55 }
 0x32a   :  { %1665 = vmatprep.subr.bf16.mxu1 %v1825_v52 }
 0x32c   :  { %979 = vmatmul.mubr.bf16.gmra.mrb[20].mxu1 %v705_v25 }
 0x32d   :  { %986 = vmatprep.mubr.bf16.mxu1 %v730_v36  ;;  %1667 = vmatpush3.bf16.msra.mxu1 %v2012_v58 }
 0x32e   :  { %1668 = vmatprep.subr.bf16.mxu1 %v1825_v52 }
 0x330   :  { %1592 = vmatmul.mubr.bf16.gmra.mrb[24].mxu0 %v741_v57 }
 0x331   :  { %1670 = vmatpush3.bf16.msra.mxu1 %v2022_v61  ;;  %1632 = vmatprep.mubr.msk.f32.mxu0 %vm1824_vm0, %v1823_v0 }
 0x332   :  { %1671 = vmatprep.subr.bf16.mxu1 %v1825_v52 }
 0x334   :  { %1369 = vmatmul.mubr.msk.bf16.gmra.mrb[24].mxu1 %vm1367_vm11, %v1368_v51 }
 0x335   :  { %1673 = vmatpush3.bf16.msra.mxu1 %v2032_v1  ;;  %1627 = vmatprep.mubr.msk.f32.mxu1 %vm1824_vm0, %v1823_v0 }
 0x336   :  { %1674 = vmatprep.subr.bf16.mxu1 %v1825_v52 }
 0x339   :  { %1676 = vmatpush3.bf16.msra.mxu1 %v2042_v4 }
 0x33a   :  { %1677 = vmatprep.subr.bf16.mxu1 %v1825_v52 }
 0x33d   :  { %1679 = vmatpush3.bf16.msra.mxu1 %v2055_v8 }
 0x33e   :  { %1680 = vmatprep.subr.bf16.mxu1 %v1825_v52 }
 0x341   :  { %1682 = vmatpush3.bf16.msra.mxu1 %v2061_v10 }
 0x3f3   :  { %v1028_v55 = vpop.f32.mrb[16].mxu0 }
 0x3f4   :  { %v1585_v58 = vpop.f32.mrb[17].mxu0 }
 0x3f5   :  { %v1031_v61 = vpop.f32.mrb[18].mxu0 }
 0x3f6   :  { %v1586_v63 = vpop.f32.mrb[19].mxu0 }
 0x3f7   :  { %v1451_v1 = vpop.f32.mrb[16].mxu1 }
 0x3f8   :  { %v1452_v2 = vpop.f32.mrb[17].mxu1 }
 0x3f9   :  { %v1453_v5 = vadd.f32 %v1452_v2, %v1451_v1  ;;  %v1454_v0 = vpop.f32.mrb[18].mxu1 }
 0x3fa   :  { %v1455_v6 = vpop.f32.mrb[19].mxu1 }
 0x3fb   :  { %v2182_v7 = vadd.f32 %v1453_v5, %v1028_v55  ;;  %v1456_v4 = vadd.f32 %v1455_v6, %v1454_v0  ;;  %v1036_v9 = vpop.f32.mrb[20].mxu0 }
 0x3fc   :  { %v1589_v12 = vpop.f32.mrb[21].mxu0 }
 0x3fd   :  { %v2184_v13 = vadd.f32 %v1456_v4, %v1031_v61  ;;  %v1039_v8 = vpop.f32.mrb[22].mxu0  ;;  %v1066_v25 = vmul.f32 %v2182_v7, %v2182_v7 }
 0x3fe   :  { %v1590_v52 = vpop.f32.mrb[23].mxu0 }
 0x3ff   :  { %v1457_v14 = vpop.f32.mrb[20].mxu1  ;;  %v1067_v3 = vmul.f32 %v2184_v13, %v2184_v13  ;;  %v1055_v28 = vadd.f32 %v2184_v13, %v2182_v7 }
 0x400   :  { %v1458_v10 = vpop.f32.mrb[21].mxu1 }
 0x401   :  { %v1459_v21 = vadd.f32 %v1458_v10, %v1457_v14  ;;  %v1460_v26 = vpop.f32.mrb[22].mxu1  ;;  %v1071_v34 = vadd.f32 %v1067_v3, %v1066_v25  ;;  %v1180_v3 = vld [vmem:[%s2246_s6] sm:$0x1] }
 0x402   :  { %v1461_v15 = vpop.f32.mrb[23].mxu1 }
 0x403   :  { %v2186_v38 = vadd.f32 %v1459_v21, %v1036_v9  ;;  %v1462_v16 = vadd.f32 %v1461_v15, %v1460_v26  ;;  %v1044_v44 = vpop.f32.mrb[24].mxu0  ;;  %v1159_v15 = vld [vmem:[%s2245_s5] sm:$0x1]  ;;  %s1828_s5 = smov [#allocation7]  }
 0x404   :  { %v1593_v17 = vpop.f32.mrb[25].mxu0  ;;  %s1301_s6 = sshll.u32 %s1828_s5, 4  ;;  %s1302_s6 = int_to_ptr.vmem [resolvable:$true] %s1301_s6 }
 0x405   :  { %v1052_v18 = vsel %vm80_vm1, %v2186_v38, 0.0  ;;  %v2193_v19 = vadd.f32 %v1462_v16, %v1039_v8  ;;  %v1047_v22 = vpop.f32.mrb[26].mxu0  ;;  %s1791_s12 = scalar_lea.vmem %s1302_s6, 640  ;;  %p1796_p3 = scmp.lt.s32.totalorder %s1302_s6, %s1302_s6 }
 0x406   :  { %v1068_v29 = vmul.f32 %v1052_v18, %v1052_v18  ;;  %v1594_v30 = vpop.f32.mrb[27].mxu0  ;;  %v1056_v35 = vadd.f32 %v1055_v28, %v1052_v18  ;;  %p1792_p2 = scmp.ne.s32.totalorder %s1302_s6, %s1791_s12  ;;  %p1797_p4 = scmp.lt.s32.totalorder %s1791_s12, %s1791_s12 }
 0x407   :  { %v1463_v31 = vpop.f32.mrb[24].mxu1  ;;  %v1069_v27 = vmul.f32 %v2193_v19, %v2193_v19 }
 0x408   :  { %v1464_v37 = vpop.f32.mrb[25].mxu1  ;;  %v1072_v42 = vadd.f32 %v1071_v34, %v1068_v29  ;;  %v1057_v47 = vadd.f32 %v1056_v35, %v2193_v19  ;;  %p1798_p5 = por %p1797_p4, %p1796_p3 }
 0x409   :  { %v1465_v39 = vadd.f32 %v1464_v37, %v1463_v31  ;;  %v1466_v40 = vpop.f32.mrb[26].mxu1 }
 0x40a   :  { %v1467_v43 = vpop.f32.mrb[27].mxu1  ;;  %v1073_v50 = vadd.f32 %v1072_v42, %v1069_v27  ;;  %p1799_p6 = pnand %p1798_p5, %p1792_p2 }
 0x40b   :  { %v1045_v45 = vadd.f32 %v1465_v39, %v1044_v44 }
 0x40d   :  { %v1058_v48 = vsel %vm429_vm2, %v1045_v45, 0.0  ;;  %v1070_v49 = vmul.f32 %v1045_v45, %v1045_v45 }
 0x40e   :  { %v1059_v53 = vadd.f32 %v1058_v48, %v1057_v47 }
 0x40f   :  { %v1074_v54 = vsel %vm429_vm2, %v1070_v49, 0.0 }
 0x410   :  { %v1060_v56 = vrot.slane %v1059_v53, 4  ;;  %v1075_v57 = vadd.f32 %v1074_v54, %v1073_v50 }
 0x412   :  { %v1061_v60 = vadd.f32 %v1060_v56, %v1059_v53  ;;  %v1076_v62 = vrot.slane %v1075_v57, 4 }
 0x414   :  { %v1062_v36 = vrot.slane %v1061_v60, 2  ;;  %v1077_v51 = vadd.f32 %v1076_v62, %v1075_v57 }
 0x416   :  { %v1063_v55 = vadd.f32 %v1062_v36, %v1061_v60  ;;  %v1078_v58 = vrot.slane %v1077_v51, 2 }
 0x418   :  { %v1064_v61 = vrot.slane %v1063_v55, 1  ;;  %v1079_v63 = vadd.f32 %v1078_v58, %v1077_v51 }
 0x41a   :  { %v1080_v1 = vrot.slane %v1079_v63, 1  ;;  %v1065_v2 = vadd.f32 %v1064_v61, %v1063_v55 }
 0x41c   :  { %v1081_v5 = vadd.f32 %v1080_v1, %v1079_v63 }
 0x41e   :  { %v1082_v0 = vsel %vm454_vm3, %v1065_v2, %v1081_v5 }
 0x41f   :  { %1628 = vmatmul.mubr.f32.vlgmr.msra.gmra.mrb[14].mxu1 %v1082_v0 }
 0x4f2   :  { %v1149_v6 = vpop.f32.mrb[14].mxu1 }
 0x4f3   :  { %v1153_v4 = vmul.f32 0.001953125, %v1149_v6  ;;  %v1629_v9 = vpop.f32.mrb[15].mxu1 }
 0x4f5   :  { %v1154_v12 = vmul.f32 %v1153_v4, %v1153_v4 }
 0x4f7   :  { %v1156_v8 = vrot.slane %v1154_v12, 7 }
 0x4f9   :  { %v1158_v52 = vsub.f32 %v1153_v4, %v1156_v8 }
 0x4fb   :  { %v1160_v14 = vadd.f32 1e-05, %v1158_v52 }
 0x4fd   :  { %1745 = vrsqrt.f32 %v1160_v14 }
 0x507   :  { %v1746_v10 = vpop.eup %1745 }
 0x508   :  { %v1169_v21 = vrot.slane %v1746_v10, %v2113_v59 }
 0x50a   :  { %v1170_v26 = vcombine.high %v1169_v21, %v1169_v21 }
 0x50c   :  { %v1177_v16 = vrot.slane %v1170_v26, %v2113_v59 }
 0x50e   :  { %v1179_v44 = vmul.f32 %v1177_v16, %v1159_v15 }
 0x510   :  { %v1181_v17 = vmul.f32 %v1179_v44, %v1153_v4 }
 0x512   :  { %v1182_v18 = vsub.f32 %v1180_v3, %v1181_v17 }
 0x514   :  { %v1187_v22 = vrot.slane %v1182_v18, %v2124_v11 }
 0x516   :  { %v1189_v25 = vsel %vm454_vm3, %v1179_v44, %v1187_v22 }
 0x517   :  { %1633 = vmatmul.mubr.msk.f32.vlgmr.msra.gmra.mrb[14].mxu0 %vm580_vm4, %v1189_v25 }
 0x5ea   :  { %v1259_v28 = vpop.f32.mrb[14].mxu0 }
 0x5eb   :  { %v1266_v29 = vrot.slane %v1259_v28, %v2124_v11  ;;  %v1634_v30 = vpop.f32.mrb[15].mxu0  ;;  %v1275_v59 = vrot.slane %v1259_v28, %v665_v46 }
 0x5ed   :  { %v1267_v31 = vmul.f32 %v1266_v29, %v2182_v7  ;;  %v1268_v34 = vmul.f32 %v1266_v29, %v2184_v13  ;;  %v1269_v35 = vmul.f32 %v1266_v29, %v2186_v38  ;;  %v1270_v37 = vmul.f32 %v1266_v29, %v2193_v19 }
 0x5ee   :  { %v1271_v39 = vmul.f32 %v1266_v29, %v1045_v45 }
 0x5ef   :  { %v1276_v40 = vadd.f32 %v1275_v59, %v1267_v31  ;;  %v1277_v42 = vadd.f32 %v1275_v59, %v1268_v34  ;;  %v1278_v27 = vadd.f32 %v1275_v59, %v1269_v35  ;;  %v1279_v43 = vadd.f32 %v1275_v59, %v1270_v37 }
 0x5f0   :  { %v1280_v47 = vadd.f32 %v1275_v59, %v1271_v39 }
 0x5f1   :  { %v1281_v11 = vadd.f32 %v1276_v40, %v1916_v23  ;;  %v1282_v48 = vadd.f32 %v1277_v42, %v1921_v24  ;;  %v1283_v20 = vadd.f32 %v1278_v27, %v1941_v32  ;;  %v1284_v46 = vadd.f32 %v1279_v43, %v1946_v33 }
 0x5f2   :  { %v1285_v7 = vadd.f32 %v1280_v47, %v1967_v41 }
 0x5f3   :  { %v1286_v13 = vmax.f32 %v1281_v11, 0.0  ;;  %v1287_v38 = vmax.f32 %v1282_v48, 0.0  ;;  %v1288_v19 = vmax.f32 %v1283_v20, 0.0  ;;  %v1289_v45 = vmax.f32 %v1284_v46, 0.0 }
 0x5f4   :  { %v1290_v49 = vmax.f32 %v1285_v7, 0.0 }
 0x5f5   :  { %1291 = vst [vmem:[#allocation7] sm:$0xff] %v1286_v13  ;;  %1292 = vst [vmem:[#allocation7 + $0x8] sm:$0xff] %v1287_v38 }
 0x5f6   :  { %1293 = vst [vmem:[#allocation7 + $0x10] sm:$0xff] %v1288_v19  ;;  %1294 = vst [vmem:[#allocation7 + $0x18] sm:$0xff] %v1289_v45 }
 0x5f7   :  { %1295 = vst [vmem:[#allocation7 + $0x20] sm:$0x3] %v1290_v49 }
 0x5f8   :  { %1802 = shalt.err (!%p1799_p6)
}
 0x5f9   :  { %s1803_s2 = scalar_lea.hbm %s2249_s9, 640 }
 0x5fa   :  { %p1804_p7 = scmp.ne.s32.totalorder %s2249_s9, %s1803_s2  ;;  %p1807_p8 = scmp.lt.u32.totalorder %s1803_s2, %s2249_s9 }
 0x5fc   :  { %p1809_p9 = pnand %p1807_p8, %p1804_p7 }
 0x5fe   :  { %1812 = shalt.err (!%p1809_p9)
}
 0x5ff   :  { %s1829_s17 = smov 128   ;;  %s1830_s18 = smov 8  }
 0x600   :  { %1307 = dma.vmem_to_hbm [thread:$0]  %s1302_s6, 640, %s2249_s9, [#allocation4], %s1829_s17, %s1829_s17, %s1830_s18  }
 0x601   :  { %1817 = dma.done.wait [#allocation4], 640  }
 0x602   :  { %1818 = vsyncadd [#allocation4], 4294966656 }
 0x603   :  { %1311 = vsyncpa [#allocation3], 1 }
 0x604   :  { %1312 = vsyncpa [#allocation6], 1 }
 0x605   :  { %1313 = vsyncpa [#allocation4], 1 }

</bundles_post_ra>
